<compile_context>
chip_gen: v6e
topology: v6e:2x2x1
jax: 0.10.0
libtpu: 0.0.40
codegen_flags: <defaults>
</compile_context>

<pallas_src>
import functools

import jax
import jax.numpy as jnp
from jax.experimental import pallas as pl
from jax.experimental.pallas import tpu as pltpu


def ffpolicy_kernel(x_ref, w_ref, b_ref, logits_ref, value_ref):
    # x_ref: (TB, n_in)   w_ref: (n_in, n_out+1)   b_ref: (1, n_out+1) f32
    # logits_ref: (TB, n_out)   value_ref: (TB, 1)
    y = (
        jnp.dot(x_ref[...], w_ref[...], preferred_element_type=jnp.float32)
        + b_ref[...]
    )
    n_out = logits_ref.shape[-1]
    logits_ref[...] = y[:, :n_out].astype(logits_ref.dtype)
    value_ref[...] = y[:, n_out:].astype(value_ref.dtype)


def _cdiv(a, b):
    return (a + b - 1) // b


def _round_up(x, m):
    return ((x + m - 1) // m) * m


def fuse_params(w_pi, b_pi, w_v, b_v, compute_dtype=jnp.float32):
    """Fuse the two heads once (call at init / after each parameter update).

    Returns:
      w_fused: (n_inputs, n_outputs + 1) in compute_dtype  ([W_pi | W_v])
      b_fused: (1, n_outputs + 1) float32                  ([b_pi | b_v])
    """
    w_fused = jnp.concatenate([w_pi, w_v], axis=1).astype(compute_dtype)
    b_fused = jnp.concatenate(
        [b_pi.reshape(1, -1), b_v.reshape(1, -1)], axis=1
    ).astype(jnp.float32)
    return w_fused, b_fused


@functools.partial(jax.jit, static_argnames=("block_b",))
def ffpolicy_forward(state, w_fused, b_fused, *, block_b=2048):
    """state: (..., n_inputs). Returns (logits (B, n_out), value (B, 1)).

    Pass `w_fused`/`b_fused` from `fuse_params`; use compute_dtype=bfloat16
    there on v6e/v7x to halve the activation HBM stream (accumulation stays
    f32 in the kernel; outputs come back in state's dtype).
    """
    n_inputs, n_fused = w_fused.shape
    n_outputs = n_fused - 1
    out_dtype = state.dtype
    compute_dtype = w_fused.dtype

    x = state.reshape(-1, n_inputs).astype(compute_dtype)  # == view(-1, n_in)
    B = x.shape[0]

    # ---- batch tiling: even split, >=2 tiles for large B (v7x megacore) ----
    nb = _cdiv(B, block_b)
    if nb == 1 and B >= 1024:
        nb = 2  # give both v7x TensorCores work
    TB = _round_up(_cdiv(B, nb), 8)  # sublane-aligned tile rows
    B_pad = TB * nb
    if B_pad != B:
        x = jnp.pad(x, ((0, B_pad - B), (0, 0)))  # zero rows: exact, discarded

    itemsize = jnp.dtype(compute_dtype).itemsize
    flops = 2 * B_pad * n_inputs * n_fused
    bytes_accessed = (
        B_pad * n_inputs * itemsize
        + n_inputs * n_fused * itemsize
        + n_fused * 4
        + B_pad * n_fused * jnp.dtype(out_dtype).itemsize
    )

    logits, value = pl.pallas_call(
        ffpolicy_kernel,
        out_shape=(
            jax.ShapeDtypeStruct((B_pad, n_outputs), out_dtype),
            jax.ShapeDtypeStruct((B_pad, 1), out_dtype),
        ),
        grid=(nb,),
        in_specs=[
            # Activations: streamed over the batch grid; K is the full array
            # dim (no pad).
            pl.BlockSpec((TB, n_inputs), lambda i: (i, 0)),
            # Fused weight / bias: constant index_map -> resident in VMEM.
            pl.BlockSpec((n_inputs, n_fused), lambda i: (0, 0)),
            pl.BlockSpec((1, n_fused), lambda i: (0, 0)),
        ],
        out_specs=(
            pl.BlockSpec((TB, n_outputs), lambda i: (i, 0)),
            pl.BlockSpec((TB, 1), lambda i: (i, 0)),
        ),
        compiler_params=pltpu.CompilerParams(
            dimension_semantics=("parallel",),
        ),
        cost_estimate=pl.CostEstimate(
            flops=flops, transcendentals=0, bytes_accessed=bytes_accessed
        ),
    )(x, w_fused, b_fused)

    return logits[:B], value[:B]


def init_params(key, n_inputs, n_outputs, dtype=jnp.float32):
    """Deterministic init matching the module shapes.
    Policy.fc1 weight: xavier_normal; bias: uniform(-1/sqrt(fan_in), +).
    Value.fc1v weight: xavier_normal; bias: uniform likewise."""
    k1, k2, k3, k4 = jax.random.split(key, 4)
    std_pi = (2.0 / (n_inputs + n_outputs)) ** 0.5
    std_v = (2.0 / (n_inputs + 1)) ** 0.5
    bound = 1.0 / (n_inputs ** 0.5)
    # stored as (n_in, n_out) -- transposed vs. PyTorch's (n_out, n_in)
    w_pi = (jax.random.normal(k1, (n_inputs, n_outputs)) * std_pi).astype(dtype)
    b_pi = jax.random.uniform(k2, (n_outputs,), minval=-bound, maxval=bound).astype(dtype)
    w_v = (jax.random.normal(k3, (n_inputs, 1)) * std_v).astype(dtype)
    b_v = jax.random.uniform(k4, (1,), minval=-bound, maxval=bound).astype(dtype)
    return w_pi, b_pi, w_v, b_v
    # TODO(synk): log_std parameter (continuous-action case) is used only in
    # act(), not in forward(); it is not part of the kernel compute path.


if __name__ == "__main__":
    key = jax.random.PRNGKey(0)
    k_state, k_params = jax.random.split(key)

    # Small env-like shapes: observation dim 16, discrete action space of 4.
    # state has a leading structure (2, 4) that forward flattens to B = 8.
    n_inputs, n_outputs = 16, 4
    state = jax.random.normal(k_state, (2, 4, n_inputs), dtype=jnp.float32)
    batch = 2 * 4

    w_pi, b_pi, w_v, b_v = init_params(k_params, n_inputs, n_outputs)

    # Reference (same math as torch nn.Linear), at highest matmul precision.
    x_flat = state.reshape(-1, n_inputs)
    ref_logits = jnp.dot(x_flat, w_pi, precision=jax.lax.Precision.HIGHEST) + b_pi
    ref_value = jnp.dot(x_flat, w_v, precision=jax.lax.Precision.HIGHEST) + b_v

    # ---- f32 compute path ------------------------------------------------
    w_fused, b_fused = fuse_params(w_pi, b_pi, w_v, b_v, jnp.float32)
    logits, value = ffpolicy_forward(state, w_fused, b_fused)
    jax.block_until_ready((logits, value))

    assert logits.shape == (batch, n_outputs)
    assert value.shape == (batch, 1)
    assert jnp.allclose(logits, ref_logits, atol=1e-4, rtol=1e-4)
    assert jnp.allclose(value, ref_value, atol=1e-4, rtol=1e-4)

    # ---- bf16 input-stream path (perf mode on v6e/v7x; f32 accumulate) ----
    w_fused_bf, b_fused_bf = fuse_params(w_pi, b_pi, w_v, b_v, jnp.bfloat16)
    logits_bf, value_bf = ffpolicy_forward(state, w_fused_bf, b_fused_bf)
    jax.block_until_ready((logits_bf, value_bf))

    assert logits_bf.dtype == state.dtype and value_bf.dtype == state.dtype
    assert jnp.allclose(logits_bf, ref_logits, atol=5e-2, rtol=5e-2)
    assert jnp.allclose(value_bf, ref_value, atol=5e-2, rtol=5e-2)

    print("KERNEL_OK")
</pallas_src>

<mosaic_0001>
module attributes {stable_mosaic.version = 11 : i64} {
  func.func @ffpolicy_kernel(%arg0: i32, %arg1: memref<8x16xf32, #tpu.memory_space<vmem>>, %arg2: memref<16x5xf32, #tpu.memory_space<vmem>>, %arg3: memref<1x5xf32, #tpu.memory_space<vmem>>, %arg4: memref<8x4xf32, #tpu.memory_space<vmem>>, %arg5: memref<8x1xf32, #tpu.memory_space<vmem>>) attributes {dimension_semantics = [#tpu.dimension_semantics<parallel>], iteration_bounds = array<i64: 1>, scalar_prefetch = 0 : i64, scratch_operands = 0 : i64, tpu.core_type = #tpu.core_type<tc>, window_params = [{transform_indices = @transform_0, window_bounds = array<i64: 8, 16>}, {pipeline_mode = #tpu.pipeline_mode<synchronous>, transform_indices = @transform_1, window_bounds = array<i64: 16, 5>}, {pipeline_mode = #tpu.pipeline_mode<synchronous>, transform_indices = @transform_2, window_bounds = array<i64: 1, 5>}, {transform_indices = @transform_3, window_bounds = array<i64: 8, 4>}, {transform_indices = @transform_4, window_bounds = array<i64: 8, 1>}]} {
    %c0 = arith.constant 0 : index
    %c0_0 = arith.constant 0 : index
    %0 = vector.load %arg1[%c0, %c0_0] : memref<8x16xf32, #tpu.memory_space<vmem>>, vector<8x16xf32>
    %c0_1 = arith.constant 0 : index
    %c0_2 = arith.constant 0 : index
    %1 = vector.load %arg2[%c0_1, %c0_2] : memref<16x5xf32, #tpu.memory_space<vmem>>, vector<16x5xf32>
    %cst = arith.constant dense<0.000000e+00> : vector<8x5xf32>
    %2 = tpu.matmul %0, %1, %cst {dimension_numbers = #tpu.dot_dimension_numbers<[1], [0], [0], [1], [0, 0, 1, 1], [], []>} : vector<8x16xf32>, vector<16x5xf32>, vector<8x5xf32> -> vector<8x5xf32>
    %c0_3 = arith.constant 0 : index
    %c0_4 = arith.constant 0 : index
    %3 = vector.load %arg3[%c0_3, %c0_4] : memref<1x5xf32, #tpu.memory_space<vmem>>, vector<1x5xf32>
    %4 = vector.broadcast %3 : vector<1x5xf32> to vector<8x5xf32>
    %5 = arith.addf %2, %4 : vector<8x5xf32>
    %6 = vector.extract_strided_slice %5 {offsets = [0, 0], sizes = [8, 4], strides = [1, 1]} : vector<8x5xf32> to vector<8x4xf32>
    %c0_5 = arith.constant 0 : index
    %c0_6 = arith.constant 0 : index
    %7 = vector.load %arg4[%c0_5, %c0_6] : memref<8x4xf32, #tpu.memory_space<vmem>>, vector<8x4xf32>
    tpu.vector_store %arg4[%c0_5, %c0_6], %6 {strides = array<i32>} : memref<8x4xf32, #tpu.memory_space<vmem>>, vector<8x4xf32>,
    %8 = vector.extract_strided_slice %5 {offsets = [0, 4], sizes = [8, 1], strides = [1, 1]} : vector<8x5xf32> to vector<8x1xf32>
    %c0_7 = arith.constant 0 : index
    %c0_8 = arith.constant 0 : index
    %9 = vector.load %arg5[%c0_7, %c0_8] : memref<8x1xf32, #tpu.memory_space<vmem>>, vector<8x1xf32>
    tpu.vector_store %arg5[%c0_7, %c0_8], %8 {strides = array<i32>} : memref<8x1xf32, #tpu.memory_space<vmem>>, vector<8x1xf32>,
    return
  }
  func.func @transform_0(%arg0: i32) -> (i32, i32) {
    %c0_i32 = arith.constant 0 : i32
    %c0_i32_0 = arith.constant 0 : i32
    return %arg0, %c0_i32 : i32, i32
  }
  func.func @transform_1(%arg0: i32) -> (i32, i32) {
    %c0_i32 = arith.constant 0 : i32
    %c0_i32_0 = arith.constant 0 : i32
    %c0_i32_1 = arith.constant 0 : i32
    return %c0_i32, %c0_i32_0 : i32, i32
  }
  func.func @transform_2(%arg0: i32) -> (i32, i32) {
    %c0_i32 = arith.constant 0 : i32
    %c0_i32_0 = arith.constant 0 : i32
    %c0_i32_1 = arith.constant 0 : i32
    return %c0_i32, %c0_i32_0 : i32, i32
  }
  func.func @transform_3(%arg0: i32) -> (i32, i32) {
    %c0_i32 = arith.constant 0 : i32
    %c0_i32_0 = arith.constant 0 : i32
    return %arg0, %c0_i32 : i32, i32
  }
  func.func @transform_4(%arg0: i32) -> (i32, i32) {
    %c0_i32 = arith.constant 0 : i32
    %c0_i32_0 = arith.constant 0 : i32
    return %arg0, %c0_i32 : i32, i32
  }
}

</mosaic_0001>

<bundles_post_ra>
// kernel: ffpolicy_forward.1
= control target key start
LH: loop header
LB: loop body
LE: loop exit
PB: predicated region body
PF: predicated region fallthrough
CT: control target
= control target key end

     0   :  { %v131_v0 = vmov 0.0   ;;  %vm132_vm0 = vmmov 0   ;;  %vm26_vm1 = vcmask 130048   ;;  %vm100_vm2 = vcmask 31744   ;;  %s133_s24 = smov 124   ;;  %s177_s1 = inlined_call_operand.vmem [shape: f32[16,5], index: 1, kind: input, shape index: {}]   ;;  %s178_s0 = inlined_call_operand.vmem [shape: f32[8,16], index: 0, kind: input, shape index: {}]   ;;  %s179_s2 = inlined_call_operand.vmem [shape: f32[1,5], index: 2, kind: input, shape index: {}]   ;;  %s180_s3 = inlined_call_operand.vmem [shape: f32[8,4], index: 3, kind: output, shape index: {0}]   ;;  %s181_s4 = inlined_call_operand.vmem [shape: f32[8,1], index: 4, kind: output, shape index: {1}]  }
   0x1   :  { %121 = vmatprep.subr.mxu0 %v131_v0  ;;  %v18_v1 = vld [vmem:[%s177_s1 + $0x8] sm:$0xff]  ;;  %v17_v2 = vld [vmem:[%s177_s1] sm:$0xff]  ;;  %125 = vmatprep.mubr.msk.f32.mxu0 %vm132_vm0, %v131_v0  ;;  %vm106_vm3 = vcmask 7168  }
   0x2   :  { %122 = vmatpush3.msra.mxu0 %v18_v1  ;;  %v16_v3 = vld [vmem:[%s178_s0] sm:$0xff] }
   0x3   :  { %123 = vmatprep.subr.mxu0 %v131_v0  ;;  %v116_v4 = vld [vmem:[%s179_s2] ss:$0 sm:$0xff] }
   0x4   :  { %124 = vmatpush3.msra.mxu0 %v17_v2 }
   0x5   :  { %126 = vmatmul.mubr.msk.f32.vlgmr.msra.gmra.mxu0 %vm26_vm1, %v16_v3 }
  0xc5   :  { %v96_v5 = vpop.f32.mrf.mxu0 }
  0xc6   :  { %v97_v6 = vadd.f32 %v116_v4, %v96_v5 }
  0xc7   :  { %v127_v7 = vpop.f32.mrf.mxu0 }
  0xc8   :  { %101 = vst.msk [vmem:[%s180_s3] sm:$0xff] %vm100_vm2, %v97_v6  ;;  %103 = vrot.lane.b32.xlu0 %v97_v6, %s133_s24 }
 0x13a   :  { %v104_v8 = vpop.permute.xlu0 %103 }
 0x13b   :  { %107 = vst.msk [vmem:[%s181_s4] sm:$0xff] %vm106_vm3, %v104_v8 }

</bundles_post_ra>
